<compile_context>
chip_gen: v7x
topology: tpu7x:2x2x1
jax: 0.10.0
libtpu: 0.0.40
codegen_flags: <defaults>
</compile_context>

<pallas_src>
import jax
import jax.numpy as jnp
from jax.experimental import pallas as pl
from jax.experimental.pallas import tpu as pltpu

# ---- model hyper-parameters (small, consistent with the module) ----
BATCH = 2
SEQ = 8            # n (problem size)
EMB = 32           # embedding_dim
HEAD_NUM = 4
QKV_DIM = 8        # qkv_dim, HEAD_NUM * QKV_DIM == EMB (as in the paper)
FF_HIDDEN = 64     # ff_hidden_dim
EPS = 1e-5         # nn.InstanceNorm1d default eps


def _instance_norm(a, gamma, beta):
    # a: (BB, N, E). InstanceNorm1d normalizes over the spatial (N) axis per
    # channel (E) per batch element, biased variance, per-channel affine.
    mean = jnp.mean(a, axis=1, keepdims=True)
    var = jnp.mean((a - mean) ** 2, axis=1, keepdims=True)
    return (a - mean) * jax.lax.rsqrt(var + EPS) * gamma + beta


def encoder_layer_kernel(x_ref, wqkv_ref, wc_ref, bc_ref, g1_ref, be1_ref,
                         w1_ref, b1_ref, w2_ref, b2_ref, g2_ref, be2_ref,
                         o_ref):
    BB, N, E = x_ref.shape            # batch block, seq, embedding
    H, D, _ = wc_ref.shape            # heads, qkv_dim, embedding
    HD = H * D
    F = BB * N                        # batch folded into rows (sublanes)

    x3 = x_ref[...]                   # (BB, N, E)
    xf = x3.reshape(F, E)             # leading-dim merge (tile-aligned, free)

    # --- fused QKV projection: ONE flat matmul, 3*H*D = 96 output lanes ---
    proj = jnp.dot(xf, wqkv_ref[...],
                   preferred_element_type=jnp.float32)          # (F, 3*H*D)

    # --- per-head attention (static unrolled loop, H is small) -------------
    scale = 1.0 / float(D) ** 0.5
    mh = jnp.zeros((F, E), jnp.float32)
    for h in range(H):
        # static lane slices out of the single projection result
        q = proj[:, h * D:(h + 1) * D].reshape(BB, N, D)
        k = proj[:, HD + h * D: HD + (h + 1) * D].reshape(BB, N, D)
        v = proj[:, 2 * HD + h * D: 2 * HD + (h + 1) * D].reshape(BB, N, D)

        s = jnp.einsum('bnd,bmd->bnm', q, k,
                       preferred_element_type=jnp.float32) * scale   # (BB,N,N)
        s = s - jnp.max(s, axis=-1, keepdims=True)
        p = jnp.exp(s)
        p = p / jnp.sum(p, axis=-1, keepdims=True)   # exact softmax denom
        o = jnp.einsum('bnm,bmd->bnd', p, v,
                       preferred_element_type=jnp.float32)            # (BB,N,D)

        # multi_head_combine, folded per head: (F, D) @ (D, E), summed over H
        mh = mh + jnp.dot(o.reshape(F, D), wc_ref[h],
                          preferred_element_type=jnp.float32)
    mh = mh + bc_ref[...]                                             # (F, E)

    # --- Add & InstanceNorm 1 ---
    out1 = _instance_norm(x3 + mh.reshape(BB, N, E), g1_ref[...], be1_ref[...])

    # --- Feed forward: W2(relu(W1(out1) + b1)) + b2 ---
    h1 = jnp.maximum(
        jnp.dot(out1.reshape(F, E), w1_ref[...],
                preferred_element_type=jnp.float32) + b1_ref[...], 0.0)
    ff = jnp.dot(h1, w2_ref[...],
                 preferred_element_type=jnp.float32) + b2_ref[...]

    # --- Add & InstanceNorm 2 ---
    out3 = _instance_norm(out1 + ff.reshape(BB, N, E), g2_ref[...], be2_ref[...])
    o_ref[...] = out3.astype(o_ref.dtype)


def prepare_params(params):
    """One-time weight packing (hoisted out of the per-call path)."""
    H, D, E = HEAD_NUM, QKV_DIM, EMB
    prep = dict(params)
    # single (E, 3*H*D) projection weight; column order = [Q heads | K | V]
    prep["wqkv"] = jnp.concatenate(
        [params["wq_t"], params["wk_t"], params["wv_t"]], axis=1)
    # combine weight kept per-head (H, D, E); no batch replication
    prep["wc_h"] = params["wc_t"].reshape(H, D, E)
    return prep


def choose_batch_block(B, N, target_rows=256, max_rows=1024):
    """Pick BB so grid >= 2 (pipelining / megacore) and BB*N ~ MXU row fill."""
    divisors = [d for d in range(1, B + 1) if B % d == 0]
    pipelined = [d for d in divisors if B // d >= 2] or divisors
    capped = [d for d in pipelined if d * N <= max_rows] or [pipelined[0]]
    return min(capped, key=lambda d: abs(d * N - target_rows))


def encoder_layer(x, prep, batch_block=None):
    B, N, E = x.shape
    H, D = HEAD_NUM, QKV_DIM
    BB = choose_batch_block(B, N) if batch_block is None else batch_block
    assert B % BB == 0

    def rep(shape):
        n = len(shape)
        return pl.BlockSpec(shape, lambda i, _n=n: (0,) * _n)

    in_specs = [
        pl.BlockSpec((BB, N, E), lambda i: (i, 0, 0)),    # x
        rep((E, 3 * H * D)),                              # packed Wq|Wk|Wv
        rep((H, D, E)),                                   # per-head Wc
        rep((1, E)),                                      # combine bias
        rep((1, E)), rep((1, E)),                         # gamma1, beta1
        rep((E, FF_HIDDEN)), rep((1, FF_HIDDEN)),         # W1, b1
        rep((FF_HIDDEN, E)), rep((1, E)),                 # W2, b2
        rep((1, E)), rep((1, E)),                         # gamma2, beta2
    ]

    return pl.pallas_call(
        encoder_layer_kernel,
        out_shape=jax.ShapeDtypeStruct((B, N, E), jnp.float32),
        grid_spec=pltpu.PrefetchScalarGridSpec(
            num_scalar_prefetch=0,
            grid=(B // BB,),
            in_specs=in_specs,
            out_specs=pl.BlockSpec((BB, N, E), lambda i: (i, 0, 0)),
        ),
        compiler_params=pltpu.CompilerParams(
            dimension_semantics=("parallel",),
            vmem_limit_bytes=32 * 1024 * 1024,
        ),
    )(x, prep["wqkv"], prep["wc_h"], prep["bc"],
      prep["gamma1"], prep["beta1"],
      prep["w1_t"], prep["b1"], prep["w2_t"], prep["b2"],
      prep["gamma2"], prep["beta2"])


def make_params(key):
    HD = HEAD_NUM * QKV_DIM
    ks = jax.random.split(key, 10)
    scale = 0.1
    return {
        # Linear y = x @ W.T  -> store transposed weights (in, out)
        "wq_t": scale * jax.random.normal(ks[0], (EMB, HD), jnp.float32),
        "wk_t": scale * jax.random.normal(ks[1], (EMB, HD), jnp.float32),
        "wv_t": scale * jax.random.normal(ks[2], (EMB, HD), jnp.float32),
        "wc_t": scale * jax.random.normal(ks[3], (HD, EMB), jnp.float32),
        "bc": scale * jax.random.normal(ks[4], (1, EMB), jnp.float32),
        "w1_t": scale * jax.random.normal(ks[5], (EMB, FF_HIDDEN), jnp.float32),
        "b1": scale * jax.random.normal(ks[6], (1, FF_HIDDEN), jnp.float32),
        "w2_t": scale * jax.random.normal(ks[7], (FF_HIDDEN, EMB), jnp.float32),
        "b2": scale * jax.random.normal(ks[8], (1, EMB), jnp.float32),
        # InstanceNorm1d(affine=True) default init: weight=1, bias=0
        "gamma1": jnp.ones((1, EMB), jnp.float32),
        "beta1": jnp.zeros((1, EMB), jnp.float32),
        "gamma2": jnp.ones((1, EMB), jnp.float32),
        "beta2": jnp.zeros((1, EMB), jnp.float32),
    }


def reference_forward(x, p):
    # Pure-JAX reference mirroring the full PyTorch semantics.
    B, N, E = x.shape
    HD = HEAD_NUM * QKV_DIM

    def heads(y):  # (B, N, H*D) -> (B, H, N, D)
        return y.reshape(B, N, HEAD_NUM, QKV_DIM).transpose(0, 2, 1, 3)

    q, k, v = heads(x @ p["wq_t"]), heads(x @ p["wk_t"]), heads(x @ p["wv_t"])
    score = jnp.einsum("bhnd,bhmd->bhnm", q, k) / jnp.sqrt(jnp.float32(QKV_DIM))
    w = jax.nn.softmax(score, axis=3)
    out = jnp.einsum("bhnm,bhmd->bhnd", w, v)
    out_concat = out.transpose(0, 2, 1, 3).reshape(B, N, HD)
    mh = out_concat @ p["wc_t"] + p["bc"]

    def inorm(a, g, b):
        m = jnp.mean(a, axis=1, keepdims=True)
        va = jnp.mean((a - m) ** 2, axis=1, keepdims=True)
        return (a - m) / jnp.sqrt(va + EPS) * g + b

    out1 = inorm(x + mh, p["gamma1"], p["beta1"])
    ff = jnp.maximum(out1 @ p["w1_t"] + p["b1"], 0.0) @ p["w2_t"] + p["b2"]
    return inorm(out1 + ff, p["gamma2"], p["beta2"])


if __name__ == "__main__":
    key = jax.random.PRNGKey(0)
    kx, kp = jax.random.split(key)
    x = jax.random.normal(kx, (BATCH, SEQ, EMB), jnp.float32)
    params = make_params(kp)
    prep = prepare_params(params)          # one-time weight packing

    out = jax.block_until_ready(encoder_layer(x, prep))
    ref = reference_forward(x, params)

    assert out.shape == (BATCH, SEQ, EMB)
    err = float(jnp.max(jnp.abs(out - ref)))
    assert jnp.allclose(out, ref, atol=1e-4, rtol=1e-4), f"max abs err {err}"
    print("KERNEL_OK")
</pallas_src>

<mosaic_0001>
module attributes {stable_mosaic.version = 11 : i64} {
  func.func @encoder_layer_kernel(%arg0: i32, %arg1: memref<1x8x32xf32, #tpu.memory_space<vmem>>, %arg2: memref<32x96xf32, #tpu.memory_space<vmem>>, %arg3: memref<4x8x32xf32, #tpu.memory_space<vmem>>, %arg4: memref<1x32xf32, #tpu.memory_space<vmem>>, %arg5: memref<1x32xf32, #tpu.memory_space<vmem>>, %arg6: memref<1x32xf32, #tpu.memory_space<vmem>>, %arg7: memref<32x64xf32, #tpu.memory_space<vmem>>, %arg8: memref<1x64xf32, #tpu.memory_space<vmem>>, %arg9: memref<64x32xf32, #tpu.memory_space<vmem>>, %arg10: memref<1x32xf32, #tpu.memory_space<vmem>>, %arg11: memref<1x32xf32, #tpu.memory_space<vmem>>, %arg12: memref<1x32xf32, #tpu.memory_space<vmem>>, %arg13: memref<1x8x32xf32, #tpu.memory_space<vmem>>) attributes {dimension_semantics = [#tpu.dimension_semantics<parallel>], iteration_bounds = array<i64: 2>, scalar_prefetch = 0 : i64, scratch_operands = 0 : i64, tpu.core_type = #tpu.core_type<tc>, window_params = [{transform_indices = @transform_0, window_bounds = array<i64: 1, 8, 32>}, {pipeline_mode = #tpu.pipeline_mode<synchronous>, transform_indices = @transform_1, window_bounds = array<i64: 32, 96>}, {pipeline_mode = #tpu.pipeline_mode<synchronous>, transform_indices = @transform_2, window_bounds = array<i64: 4, 8, 32>}, {pipeline_mode = #tpu.pipeline_mode<synchronous>, transform_indices = @transform_3, window_bounds = array<i64: 1, 32>}, {pipeline_mode = #tpu.pipeline_mode<synchronous>, transform_indices = @transform_4, window_bounds = array<i64: 1, 32>}, {pipeline_mode = #tpu.pipeline_mode<synchronous>, transform_indices = @transform_5, window_bounds = array<i64: 1, 32>}, {pipeline_mode = #tpu.pipeline_mode<synchronous>, transform_indices = @transform_6, window_bounds = array<i64: 32, 64>}, {pipeline_mode = #tpu.pipeline_mode<synchronous>, transform_indices = @transform_7, window_bounds = array<i64: 1, 64>}, {pipeline_mode = #tpu.pipeline_mode<synchronous>, transform_indices = @transform_8, window_bounds = array<i64: 64, 32>}, {pipeline_mode = #tpu.pipeline_mode<synchronous>, transform_indices = @transform_9, window_bounds = array<i64: 1, 32>}, {pipeline_mode = #tpu.pipeline_mode<synchronous>, transform_indices = @transform_10, window_bounds = array<i64: 1, 32>}, {pipeline_mode = #tpu.pipeline_mode<synchronous>, transform_indices = @transform_11, window_bounds = array<i64: 1, 32>}, {transform_indices = @transform_12, window_bounds = array<i64: 1, 8, 32>}]} {
    %c0 = arith.constant 0 : index
    %c0_0 = arith.constant 0 : index
    %c0_1 = arith.constant 0 : index
    %0 = vector.load %arg1[%c0, %c0_0, %c0_1] : memref<1x8x32xf32, #tpu.memory_space<vmem>>, vector<1x8x32xf32>
    %1 = vector.shape_cast %0 : vector<1x8x32xf32> to vector<8x32xf32>
    %c0_2 = arith.constant 0 : index
    %c0_3 = arith.constant 0 : index
    %2 = vector.load %arg2[%c0_2, %c0_3] : memref<32x96xf32, #tpu.memory_space<vmem>>, vector<32x96xf32>
    %cst = arith.constant dense<0.000000e+00> : vector<8x96xf32>
    %3 = tpu.matmul %1, %2, %cst {dimension_numbers = #tpu.dot_dimension_numbers<[1], [0], [0], [1], [0, 0, 1, 1], [], []>} : vector<8x32xf32>, vector<32x96xf32>, vector<8x96xf32> -> vector<8x96xf32>
    %cst_4 = arith.constant 0.000000e+00 : f32
    %4 = vector.broadcast %cst_4 : f32 to vector<8x32xf32>
    %5 = vector.extract_strided_slice %3 {offsets = [0, 0], sizes = [8, 8], strides = [1, 1]} : vector<8x96xf32> to vector<8x8xf32>
    %6 = vector.shape_cast %5 : vector<8x8xf32> to vector<1x8x8xf32>
    %7 = vector.extract_strided_slice %3 {offsets = [0, 32], sizes = [8, 8], strides = [1, 1]} : vector<8x96xf32> to vector<8x8xf32>
    %8 = vector.shape_cast %7 : vector<8x8xf32> to vector<1x8x8xf32>
    %9 = vector.extract_strided_slice %3 {offsets = [0, 64], sizes = [8, 8], strides = [1, 1]} : vector<8x96xf32> to vector<8x8xf32>
    %10 = vector.shape_cast %9 : vector<8x8xf32> to vector<1x8x8xf32>
    "tpu.trace_start"() <{level = 10 : i32, message = "bnd,bmd->bnm"}> : () -> ()
    %cst_5 = arith.constant dense<0.000000e+00> : vector<1x8x8xf32>
    %11 = tpu.matmul %6, %8, %cst_5 {dimension_numbers = #tpu.dot_dimension_numbers<[2], [2], [1], [1], [0, 0, 0, 1, 1, 1], [0], [0]>} : vector<1x8x8xf32>, vector<1x8x8xf32>, vector<1x8x8xf32> -> vector<1x8x8xf32>
    "tpu.trace_stop"() : () -> ()
    %cst_6 = arith.constant 0.353553385 : f32
    %12 = vector.broadcast %cst_6 : f32 to vector<1x8x8xf32>
    %13 = arith.mulf %11, %12 : vector<1x8x8xf32>
    %cst_7 = arith.constant dense<0xFF800000> : vector<1x8xf32>
    %14 = vector.multi_reduction <maximumf>, %13, %cst_7 [2] : vector<1x8x8xf32> to vector<1x8xf32>
    %15 = vector.shape_cast %14 : vector<1x8xf32> to vector<1x8x1xf32>
    %16 = vector.broadcast %15 : vector<1x8x1xf32> to vector<1x8x8xf32>
    %17 = arith.subf %13, %16 : vector<1x8x8xf32>
    %18 = math.exp %17 : vector<1x8x8xf32>
    %cst_8 = arith.constant dense<0.000000e+00> : vector<1x8xf32>
    %19 = vector.multi_reduction <add>, %18, %cst_8 [2] : vector<1x8x8xf32> to vector<1x8xf32>
    %20 = vector.shape_cast %19 : vector<1x8xf32> to vector<1x8x1xf32>
    %21 = vector.broadcast %20 : vector<1x8x1xf32> to vector<1x8x8xf32>
    %22 = arith.divf %18, %21 : vector<1x8x8xf32>
    "tpu.trace_start"() <{level = 10 : i32, message = "bnm,bmd->bnd"}> : () -> ()
    %cst_9 = arith.constant dense<0.000000e+00> : vector<1x8x8xf32>
    %23 = tpu.matmul %22, %10, %cst_9 {dimension_numbers = #tpu.dot_dimension_numbers<[2], [1], [1], [2], [0, 0, 0, 1, 1, 2], [0], [0]>} : vector<1x8x8xf32>, vector<1x8x8xf32>, vector<1x8x8xf32> -> vector<1x8x8xf32>
    "tpu.trace_stop"() : () -> ()
    %24 = vector.shape_cast %23 : vector<1x8x8xf32> to vector<8x8xf32>
    %c0_10 = arith.constant 0 : index
    %c0_11 = arith.constant 0 : index
    %c0_12 = arith.constant 0 : index
    %25 = vector.load %arg3[%c0_10, %c0_11, %c0_12] : memref<4x8x32xf32, #tpu.memory_space<vmem>>, vector<1x8x32xf32>
    %26 = vector.shape_cast %25 : vector<1x8x32xf32> to vector<8x32xf32>
    %cst_13 = arith.constant dense<0.000000e+00> : vector<8x32xf32>
    %27 = tpu.matmul %24, %26, %cst_13 {dimension_numbers = #tpu.dot_dimension_numbers<[1], [0], [0], [1], [0, 0, 1, 1], [], []>} : vector<8x8xf32>, vector<8x32xf32>, vector<8x32xf32> -> vector<8x32xf32>
    %28 = arith.addf %4, %27 : vector<8x32xf32>
    %29 = vector.extract_strided_slice %3 {offsets = [0, 8], sizes = [8, 8], strides = [1, 1]} : vector<8x96xf32> to vector<8x8xf32>
    %30 = vector.shape_cast %29 : vector<8x8xf32> to vector<1x8x8xf32>
    %31 = vector.extract_strided_slice %3 {offsets = [0, 40], sizes = [8, 8], strides = [1, 1]} : vector<8x96xf32> to vector<8x8xf32>
    %32 = vector.shape_cast %31 : vector<8x8xf32> to vector<1x8x8xf32>
    %33 = vector.extract_strided_slice %3 {offsets = [0, 72], sizes = [8, 8], strides = [1, 1]} : vector<8x96xf32> to vector<8x8xf32>
    %34 = vector.shape_cast %33 : vector<8x8xf32> to vector<1x8x8xf32>
    "tpu.trace_start"() <{level = 10 : i32, message = "bnd,bmd->bnm"}> : () -> ()
    %cst_14 = arith.constant dense<0.000000e+00> : vector<1x8x8xf32>
    %35 = tpu.matmul %30, %32, %cst_14 {dimension_numbers = #tpu.dot_dimension_numbers<[2], [2], [1], [1], [0, 0, 0, 1, 1, 1], [0], [0]>} : vector<1x8x8xf32>, vector<1x8x8xf32>, vector<1x8x8xf32> -> vector<1x8x8xf32>
    "tpu.trace_stop"() : () -> ()
    %cst_15 = arith.constant 0.353553385 : f32
    %36 = vector.broadcast %cst_15 : f32 to vector<1x8x8xf32>
    %37 = arith.mulf %35, %36 : vector<1x8x8xf32>
    %cst_16 = arith.constant dense<0xFF800000> : vector<1x8xf32>
    %38 = vector.multi_reduction <maximumf>, %37, %cst_16 [2] : vector<1x8x8xf32> to vector<1x8xf32>
    %39 = vector.shape_cast %38 : vector<1x8xf32> to vector<1x8x1xf32>
    %40 = vector.broadcast %39 : vector<1x8x1xf32> to vector<1x8x8xf32>
    %41 = arith.subf %37, %40 : vector<1x8x8xf32>
    %42 = math.exp %41 : vector<1x8x8xf32>
    %cst_17 = arith.constant dense<0.000000e+00> : vector<1x8xf32>
    %43 = vector.multi_reduction <add>, %42, %cst_17 [2] : vector<1x8x8xf32> to vector<1x8xf32>
    %44 = vector.shape_cast %43 : vector<1x8xf32> to vector<1x8x1xf32>
    %45 = vector.broadcast %44 : vector<1x8x1xf32> to vector<1x8x8xf32>
    %46 = arith.divf %42, %45 : vector<1x8x8xf32>
    "tpu.trace_start"() <{level = 10 : i32, message = "bnm,bmd->bnd"}> : () -> ()
    %cst_18 = arith.constant dense<0.000000e+00> : vector<1x8x8xf32>
    %47 = tpu.matmul %46, %34, %cst_18 {dimension_numbers = #tpu.dot_dimension_numbers<[2], [1], [1], [2], [0, 0, 0, 1, 1, 2], [0], [0]>} : vector<1x8x8xf32>, vector<1x8x8xf32>, vector<1x8x8xf32> -> vector<1x8x8xf32>
    "tpu.trace_stop"() : () -> ()
    %48 = vector.shape_cast %47 : vector<1x8x8xf32> to vector<8x8xf32>
    %c1 = arith.constant 1 : index
    %c0_19 = arith.constant 0 : index
    %c0_20 = arith.constant 0 : index
    %49 = vector.load %arg3[%c1, %c0_19, %c0_20] : memref<4x8x32xf32, #tpu.memory_space<vmem>>, vector<1x8x32xf32>
    %50 = vector.shape_cast %49 : vector<1x8x32xf32> to vector<8x32xf32>
    %cst_21 = arith.constant dense<0.000000e+00> : vector<8x32xf32>
    %51 = tpu.matmul %48, %50, %cst_21 {dimension_numbers = #tpu.dot_dimension_numbers<[1], [0], [0], [1], [0, 0, 1, 1], [], []>} : vector<8x8xf32>, vector<8x32xf32>, vector<8x32xf32> -> vector<8x32xf32>
    %52 = arith.addf %28, %51 : vector<8x32xf32>
    %53 = vector.extract_strided_slice %3 {offsets = [0, 16], sizes = [8, 8], strides = [1, 1]} : vector<8x96xf32> to vector<8x8xf32>
    %54 = vector.shape_cast %53 : vector<8x8xf32> to vector<1x8x8xf32>
    %55 = vector.extract_strided_slice %3 {offsets = [0, 48], sizes = [8, 8], strides = [1, 1]} : vector<8x96xf32> to vector<8x8xf32>
    %56 = vector.shape_cast %55 : vector<8x8xf32> to vector<1x8x8xf32>
    %57 = vector.extract_strided_slice %3 {offsets = [0, 80], sizes = [8, 8], strides = [1, 1]} : vector<8x96xf32> to vector<8x8xf32>
    %58 = vector.shape_cast %57 : vector<8x8xf32> to vector<1x8x8xf32>
    "tpu.trace_start"() <{level = 10 : i32, message = "bnd,bmd->bnm"}> : () -> ()
    %cst_22 = arith.constant dense<0.000000e+00> : vector<1x8x8xf32>
    %59 = tpu.matmul %54, %56, %cst_22 {dimension_numbers = #tpu.dot_dimension_numbers<[2], [2], [1], [1], [0, 0, 0, 1, 1, 1], [0], [0]>} : vector<1x8x8xf32>, vector<1x8x8xf32>, vector<1x8x8xf32> -> vector<1x8x8xf32>
    "tpu.trace_stop"() : () -> ()
    %cst_23 = arith.constant 0.353553385 : f32
    %60 = vector.broadcast %cst_23 : f32 to vector<1x8x8xf32>
    %61 = arith.mulf %59, %60 : vector<1x8x8xf32>
    %cst_24 = arith.constant dense<0xFF800000> : vector<1x8xf32>
    %62 = vector.multi_reduction <maximumf>, %61, %cst_24 [2] : vector<1x8x8xf32> to vector<1x8xf32>
    %63 = vector.shape_cast %62 : vector<1x8xf32> to vector<1x8x1xf32>
    %64 = vector.broadcast %63 : vector<1x8x1xf32> to vector<1x8x8xf32>
    %65 = arith.subf %61, %64 : vector<1x8x8xf32>
    %66 = math.exp %65 : vector<1x8x8xf32>
    %cst_25 = arith.constant dense<0.000000e+00> : vector<1x8xf32>
    %67 = vector.multi_reduction <add>, %66, %cst_25 [2] : vector<1x8x8xf32> to vector<1x8xf32>
    %68 = vector.shape_cast %67 : vector<1x8xf32> to vector<1x8x1xf32>
    %69 = vector.broadcast %68 : vector<1x8x1xf32> to vector<1x8x8xf32>
    %70 = arith.divf %66, %69 : vector<1x8x8xf32>
    "tpu.trace_start"() <{level = 10 : i32, message = "bnm,bmd->bnd"}> : () -> ()
    %cst_26 = arith.constant dense<0.000000e+00> : vector<1x8x8xf32>
    %71 = tpu.matmul %70, %58, %cst_26 {dimension_numbers = #tpu.dot_dimension_numbers<[2], [1], [1], [2], [0, 0, 0, 1, 1, 2], [0], [0]>} : vector<1x8x8xf32>, vector<1x8x8xf32>, vector<1x8x8xf32> -> vector<1x8x8xf32>
    "tpu.trace_stop"() : () -> ()
    %72 = vector.shape_cast %71 : vector<1x8x8xf32> to vector<8x8xf32>
    %c2 = arith.constant 2 : index
    %c0_27 = arith.constant 0 : index
    %c0_28 = arith.constant 0 : index
    %73 = vector.load %arg3[%c2, %c0_27, %c0_28] : memref<4x8x32xf32, #tpu.memory_space<vmem>>, vector<1x8x32xf32>
    %74 = vector.shape_cast %73 : vector<1x8x32xf32> to vector<8x32xf32>
    %cst_29 = arith.constant dense<0.000000e+00> : vector<8x32xf32>
    %75 = tpu.matmul %72, %74, %cst_29 {dimension_numbers = #tpu.dot_dimension_numbers<[1], [0], [0], [1], [0, 0, 1, 1], [], []>} : vector<8x8xf32>, vector<8x32xf32>, vector<8x32xf32> -> vector<8x32xf32>
    %76 = arith.addf %52, %75 : vector<8x32xf32>
    %77 = vector.extract_strided_slice %3 {offsets = [0, 24], sizes = [8, 8], strides = [1, 1]} : vector<8x96xf32> to vector<8x8xf32>
    %78 = vector.shape_cast %77 : vector<8x8xf32> to vector<1x8x8xf32>
    %79 = vector.extract_strided_slice %3 {offsets = [0, 56], sizes = [8, 8], strides = [1, 1]} : vector<8x96xf32> to vector<8x8xf32>
    %80 = vector.shape_cast %79 : vector<8x8xf32> to vector<1x8x8xf32>
    %81 = vector.extract_strided_slice %3 {offsets = [0, 88], sizes = [8, 8], strides = [1, 1]} : vector<8x96xf32> to vector<8x8xf32>
    %82 = vector.shape_cast %81 : vector<8x8xf32> to vector<1x8x8xf32>
    "tpu.trace_start"() <{level = 10 : i32, message = "bnd,bmd->bnm"}> : () -> ()
    %cst_30 = arith.constant dense<0.000000e+00> : vector<1x8x8xf32>
    %83 = tpu.matmul %78, %80, %cst_30 {dimension_numbers = #tpu.dot_dimension_numbers<[2], [2], [1], [1], [0, 0, 0, 1, 1, 1], [0], [0]>} : vector<1x8x8xf32>, vector<1x8x8xf32>, vector<1x8x8xf32> -> vector<1x8x8xf32>
    "tpu.trace_stop"() : () -> ()
    %cst_31 = arith.constant 0.353553385 : f32
    %84 = vector.broadcast %cst_31 : f32 to vector<1x8x8xf32>
    %85 = arith.mulf %83, %84 : vector<1x8x8xf32>
    %cst_32 = arith.constant dense<0xFF800000> : vector<1x8xf32>
    %86 = vector.multi_reduction <maximumf>, %85, %cst_32 [2] : vector<1x8x8xf32> to vector<1x8xf32>
    %87 = vector.shape_cast %86 : vector<1x8xf32> to vector<1x8x1xf32>
    %88 = vector.broadcast %87 : vector<1x8x1xf32> to vector<1x8x8xf32>
    %89 = arith.subf %85, %88 : vector<1x8x8xf32>
    %90 = math.exp %89 : vector<1x8x8xf32>
    %cst_33 = arith.constant dense<0.000000e+00> : vector<1x8xf32>
    %91 = vector.multi_reduction <add>, %90, %cst_33 [2] : vector<1x8x8xf32> to vector<1x8xf32>
    %92 = vector.shape_cast %91 : vector<1x8xf32> to vector<1x8x1xf32>
    %93 = vector.broadcast %92 : vector<1x8x1xf32> to vector<1x8x8xf32>
    %94 = arith.divf %90, %93 : vector<1x8x8xf32>
    "tpu.trace_start"() <{level = 10 : i32, message = "bnm,bmd->bnd"}> : () -> ()
    %cst_34 = arith.constant dense<0.000000e+00> : vector<1x8x8xf32>
    %95 = tpu.matmul %94, %82, %cst_34 {dimension_numbers = #tpu.dot_dimension_numbers<[2], [1], [1], [2], [0, 0, 0, 1, 1, 2], [0], [0]>} : vector<1x8x8xf32>, vector<1x8x8xf32>, vector<1x8x8xf32> -> vector<1x8x8xf32>
    "tpu.trace_stop"() : () -> ()
    %96 = vector.shape_cast %95 : vector<1x8x8xf32> to vector<8x8xf32>
    %c3 = arith.constant 3 : index
    %c0_35 = arith.constant 0 : index
    %c0_36 = arith.constant 0 : index
    %97 = vector.load %arg3[%c3, %c0_35, %c0_36] : memref<4x8x32xf32, #tpu.memory_space<vmem>>, vector<1x8x32xf32>
    %98 = vector.shape_cast %97 : vector<1x8x32xf32> to vector<8x32xf32>
    %cst_37 = arith.constant dense<0.000000e+00> : vector<8x32xf32>
    %99 = tpu.matmul %96, %98, %cst_37 {dimension_numbers = #tpu.dot_dimension_numbers<[1], [0], [0], [1], [0, 0, 1, 1], [], []>} : vector<8x8xf32>, vector<8x32xf32>, vector<8x32xf32> -> vector<8x32xf32>
    %100 = arith.addf %76, %99 : vector<8x32xf32>
    %c0_38 = arith.constant 0 : index
    %c0_39 = arith.constant 0 : index
    %101 = vector.load %arg4[%c0_38, %c0_39] : memref<1x32xf32, #tpu.memory_space<vmem>>, vector<1x32xf32>
    %102 = vector.broadcast %101 : vector<1x32xf32> to vector<8x32xf32>
    %103 = arith.addf %100, %102 : vector<8x32xf32>
    %104 = vector.shape_cast %103 : vector<8x32xf32> to vector<1x8x32xf32>
    %105 = arith.addf %0, %104 : vector<1x8x32xf32>
    %c0_40 = arith.constant 0 : index
    %c0_41 = arith.constant 0 : index
    %106 = vector.load %arg5[%c0_40, %c0_41] : memref<1x32xf32, #tpu.memory_space<vmem>>, vector<1x32xf32>
    %c0_42 = arith.constant 0 : index
    %c0_43 = arith.constant 0 : index
    %107 = vector.load %arg6[%c0_42, %c0_43] : memref<1x32xf32, #tpu.memory_space<vmem>>, vector<1x32xf32>
    %cst_44 = arith.constant dense<0.000000e+00> : vector<1x32xf32>
    %108 = vector.multi_reduction <add>, %105, %cst_44 [1] : vector<1x8x32xf32> to vector<1x32xf32>
    %109 = vector.shape_cast %108 : vector<1x32xf32> to vector<1x1x32xf32>
    %cst_45 = arith.constant 8.000000e+00 : f32
    %110 = vector.broadcast %cst_45 : f32 to vector<1x1x32xf32>
    %111 = arith.divf %109, %110 : vector<1x1x32xf32>
    %112 = vector.broadcast %111 : vector<1x1x32xf32> to vector<1x8x32xf32>
    %113 = arith.subf %105, %112 : vector<1x8x32xf32>
    %114 = arith.mulf %113, %113 : vector<1x8x32xf32>
    %cst_46 = arith.constant dense<0.000000e+00> : vector<1x32xf32>
    %115 = vector.multi_reduction <add>, %114, %cst_46 [1] : vector<1x8x32xf32> to vector<1x32xf32>
    %116 = vector.shape_cast %115 : vector<1x32xf32> to vector<1x1x32xf32>
    %cst_47 = arith.constant 8.000000e+00 : f32
    %117 = vector.broadcast %cst_47 : f32 to vector<1x1x32xf32>
    %118 = arith.divf %116, %117 : vector<1x1x32xf32>
    %119 = vector.broadcast %111 : vector<1x1x32xf32> to vector<1x8x32xf32>
    %120 = arith.subf %105, %119 : vector<1x8x32xf32>
    %cst_48 = arith.constant 9.99999974E-6 : f32
    %121 = vector.broadcast %cst_48 : f32 to vector<1x1x32xf32>
    %122 = arith.addf %118, %121 : vector<1x1x32xf32>
    %123 = math.rsqrt %122 : vector<1x1x32xf32>
    %124 = vector.broadcast %123 : vector<1x1x32xf32> to vector<1x8x32xf32>
    %125 = arith.mulf %120, %124 : vector<1x8x32xf32>
    %126 = vector.shape_cast %106 : vector<1x32xf32> to vector<1x1x32xf32>
    %127 = vector.broadcast %126 : vector<1x1x32xf32> to vector<1x8x32xf32>
    %128 = arith.mulf %125, %127 : vector<1x8x32xf32>
    %129 = vector.shape_cast %107 : vector<1x32xf32> to vector<1x1x32xf32>
    %130 = vector.broadcast %129 : vector<1x1x32xf32> to vector<1x8x32xf32>
    %131 = arith.addf %128, %130 : vector<1x8x32xf32>
    %132 = vector.shape_cast %131 : vector<1x8x32xf32> to vector<8x32xf32>
    %c0_49 = arith.constant 0 : index
    %c0_50 = arith.constant 0 : index
    %133 = vector.load %arg7[%c0_49, %c0_50] : memref<32x64xf32, #tpu.memory_space<vmem>>, vector<32x64xf32>
    %cst_51 = arith.constant dense<0.000000e+00> : vector<8x64xf32>
    %134 = tpu.matmul %132, %133, %cst_51 {dimension_numbers = #tpu.dot_dimension_numbers<[1], [0], [0], [1], [0, 0, 1, 1], [], []>} : vector<8x32xf32>, vector<32x64xf32>, vector<8x64xf32> -> vector<8x64xf32>
    %c0_52 = arith.constant 0 : index
    %c0_53 = arith.constant 0 : index
    %135 = vector.load %arg8[%c0_52, %c0_53] : memref<1x64xf32, #tpu.memory_space<vmem>>, vector<1x64xf32>
    %136 = vector.broadcast %135 : vector<1x64xf32> to vector<8x64xf32>
    %137 = arith.addf %134, %136 : vector<8x64xf32>
    %cst_54 = arith.constant 0.000000e+00 : f32
    %138 = vector.broadcast %cst_54 : f32 to vector<8x64xf32>
    %139 = arith.maximumf %137, %138 : vector<8x64xf32>
    %c0_55 = arith.constant 0 : index
    %c0_56 = arith.constant 0 : index
    %140 = vector.load %arg9[%c0_55, %c0_56] : memref<64x32xf32, #tpu.memory_space<vmem>>, vector<64x32xf32>
    %cst_57 = arith.constant dense<0.000000e+00> : vector<8x32xf32>
    %141 = tpu.matmul %139, %140, %cst_57 {dimension_numbers = #tpu.dot_dimension_numbers<[1], [0], [0], [1], [0, 0, 1, 1], [], []>} : vector<8x64xf32>, vector<64x32xf32>, vector<8x32xf32> -> vector<8x32xf32>
    %c0_58 = arith.constant 0 : index
    %c0_59 = arith.constant 0 : index
    %142 = vector.load %arg10[%c0_58, %c0_59] : memref<1x32xf32, #tpu.memory_space<vmem>>, vector<1x32xf32>
    %143 = vector.broadcast %142 : vector<1x32xf32> to vector<8x32xf32>
    %144 = arith.addf %141, %143 : vector<8x32xf32>
    %145 = vector.shape_cast %144 : vector<8x32xf32> to vector<1x8x32xf32>
    %146 = arith.addf %131, %145 : vector<1x8x32xf32>
    %c0_60 = arith.constant 0 : index
    %c0_61 = arith.constant 0 : index
    %147 = vector.load %arg11[%c0_60, %c0_61] : memref<1x32xf32, #tpu.memory_space<vmem>>, vector<1x32xf32>
    %c0_62 = arith.constant 0 : index
    %c0_63 = arith.constant 0 : index
    %148 = vector.load %arg12[%c0_62, %c0_63] : memref<1x32xf32, #tpu.memory_space<vmem>>, vector<1x32xf32>
    %cst_64 = arith.constant dense<0.000000e+00> : vector<1x32xf32>
    %149 = vector.multi_reduction <add>, %146, %cst_64 [1] : vector<1x8x32xf32> to vector<1x32xf32>
    %150 = vector.shape_cast %149 : vector<1x32xf32> to vector<1x1x32xf32>
    %cst_65 = arith.constant 8.000000e+00 : f32
    %151 = vector.broadcast %cst_65 : f32 to vector<1x1x32xf32>
    %152 = arith.divf %150, %151 : vector<1x1x32xf32>
    %153 = vector.broadcast %152 : vector<1x1x32xf32> to vector<1x8x32xf32>
    %154 = arith.subf %146, %153 : vector<1x8x32xf32>
    %155 = arith.mulf %154, %154 : vector<1x8x32xf32>
    %cst_66 = arith.constant dense<0.000000e+00> : vector<1x32xf32>
    %156 = vector.multi_reduction <add>, %155, %cst_66 [1] : vector<1x8x32xf32> to vector<1x32xf32>
    %157 = vector.shape_cast %156 : vector<1x32xf32> to vector<1x1x32xf32>
    %cst_67 = arith.constant 8.000000e+00 : f32
    %158 = vector.broadcast %cst_67 : f32 to vector<1x1x32xf32>
    %159 = arith.divf %157, %158 : vector<1x1x32xf32>
    %160 = vector.broadcast %152 : vector<1x1x32xf32> to vector<1x8x32xf32>
    %161 = arith.subf %146, %160 : vector<1x8x32xf32>
    %cst_68 = arith.constant 9.99999974E-6 : f32
    %162 = vector.broadcast %cst_68 : f32 to vector<1x1x32xf32>
    %163 = arith.addf %159, %162 : vector<1x1x32xf32>
    %164 = math.rsqrt %163 : vector<1x1x32xf32>
    %165 = vector.broadcast %164 : vector<1x1x32xf32> to vector<1x8x32xf32>
    %166 = arith.mulf %161, %165 : vector<1x8x32xf32>
    %167 = vector.shape_cast %147 : vector<1x32xf32> to vector<1x1x32xf32>
    %168 = vector.broadcast %167 : vector<1x1x32xf32> to vector<1x8x32xf32>
    %169 = arith.mulf %166, %168 : vector<1x8x32xf32>
    %170 = vector.shape_cast %148 : vector<1x32xf32> to vector<1x1x32xf32>
    %171 = vector.broadcast %170 : vector<1x1x32xf32> to vector<1x8x32xf32>
    %172 = arith.addf %169, %171 : vector<1x8x32xf32>
    %c0_69 = arith.constant 0 : index
    %c0_70 = arith.constant 0 : index
    %c0_71 = arith.constant 0 : index
    %173 = vector.load %arg13[%c0_69, %c0_70, %c0_71] : memref<1x8x32xf32, #tpu.memory_space<vmem>>, vector<1x8x32xf32>
    tpu.vector_store %arg13[%c0_69, %c0_70, %c0_71], %172 {strides = array<i32>} : memref<1x8x32xf32, #tpu.memory_space<vmem>>, vector<1x8x32xf32>,
    return
  }
  func.func @transform_0(%arg0: i32) -> (i32, i32, i32) {
    %c0_i32 = arith.constant 0 : i32
    %c0_i32_0 = arith.constant 0 : i32
    %c0_i32_1 = arith.constant 0 : i32
    return %arg0, %c0_i32, %c0_i32_0 : i32, i32, i32
  }
  func.func @transform_1(%arg0: i32) -> (i32, i32) {
    %c0_i32 = arith.constant 0 : i32
    %c0_i32_0 = arith.constant 0 : i32
    %c0_i32_1 = arith.constant 0 : i32
    return %c0_i32, %c0_i32_0 : i32, i32
  }
  func.func @transform_2(%arg0: i32) -> (i32, i32, i32) {
    %c0_i32 = arith.constant 0 : i32
    %c0_i32_0 = arith.constant 0 : i32
    %c0_i32_1 = arith.constant 0 : i32
    %c0_i32_2 = arith.constant 0 : i32
    return %c0_i32, %c0_i32_0, %c0_i32_1 : i32, i32, i32
  }
  func.func @transform_3(%arg0: i32) -> (i32, i32) {
    %c0_i32 = arith.constant 0 : i32
    %c0_i32_0 = arith.constant 0 : i32
    %c0_i32_1 = arith.constant 0 : i32
    return %c0_i32, %c0_i32_0 : i32, i32
  }
  func.func @transform_4(%arg0: i32) -> (i32, i32) {
    %c0_i32 = arith.constant 0 : i32
    %c0_i32_0 = arith.constant 0 : i32
    %c0_i32_1 = arith.constant 0 : i32
    return %c0_i32, %c0_i32_0 : i32, i32
  }
  func.func @transform_5(%arg0: i32) -> (i32, i32) {
    %c0_i32 = arith.constant 0 : i32
    %c0_i32_0 = arith.constant 0 : i32
    %c0_i32_1 = arith.constant 0 : i32
    return %c0_i32, %c0_i32_0 : i32, i32
  }
  func.func @transform_6(%arg0: i32) -> (i32, i32) {
    %c0_i32 = arith.constant 0 : i32
    %c0_i32_0 = arith.constant 0 : i32
    %c0_i32_1 = arith.constant 0 : i32
    return %c0_i32, %c0_i32_0 : i32, i32
  }
  func.func @transform_7(%arg0: i32) -> (i32, i32) {
    %c0_i32 = arith.constant 0 : i32
    %c0_i32_0 = arith.constant 0 : i32
    %c0_i32_1 = arith.constant 0 : i32
    return %c0_i32, %c0_i32_0 : i32, i32
  }
  func.func @transform_8(%arg0: i32) -> (i32, i32) {
    %c0_i32 = arith.constant 0 : i32
    %c0_i32_0 = arith.constant 0 : i32
    %c0_i32_1 = arith.constant 0 : i32
    return %c0_i32, %c0_i32_0 : i32, i32
  }
  func.func @transform_9(%arg0: i32) -> (i32, i32) {
    %c0_i32 = arith.constant 0 : i32
    %c0_i32_0 = arith.constant 0 : i32
    %c0_i32_1 = arith.constant 0 : i32
    return %c0_i32, %c0_i32_0 : i32, i32
  }
  func.func @transform_10(%arg0: i32) -> (i32, i32) {
    %c0_i32 = arith.constant 0 : i32
    %c0_i32_0 = arith.constant 0 : i32
    %c0_i32_1 = arith.constant 0 : i32
    return %c0_i32, %c0_i32_0 : i32, i32
  }
  func.func @transform_11(%arg0: i32) -> (i32, i32) {
    %c0_i32 = arith.constant 0 : i32
    %c0_i32_0 = arith.constant 0 : i32
    %c0_i32_1 = arith.constant 0 : i32
    return %c0_i32, %c0_i32_0 : i32, i32
  }
  func.func @transform_12(%arg0: i32) -> (i32, i32, i32) {
    %c0_i32 = arith.constant 0 : i32
    %c0_i32_0 = arith.constant 0 : i32
    %c0_i32_1 = arith.constant 0 : i32
    return %arg0, %c0_i32, %c0_i32_0 : i32, i32, i32
  }
}

</mosaic_0001>

<bundles_post_ra>
// kernel: tpu_custom_call.1
= control target key start
LH: loop header
LB: loop body
LE: loop exit
PB: predicated region body
PF: predicated region fallthrough
CT: control target
= control target key end

     0   :  { %17 = vsyncpa [#allocation3], 0  ;;  %s2633_s0 = inlined_call_operand.hbm [shape: f32[2,8,32], index: 0, kind: input, shape index: {}]   ;;  %s2634_s1 = inlined_call_operand.vmem [shape: f32[32,96], index: 1, kind: input, shape index: {}]   ;;  %s2635_s2 = inlined_call_operand.vmem [shape: f32[4,8,32], index: 2, kind: input, shape index: {}]   ;;  %s2636_s3 = inlined_call_operand.vmem [shape: f32[1,32], index: 3, kind: input, shape index: {}]   ;;  %s2637_s4 = inlined_call_operand.vmem [shape: f32[1,32], index: 4, kind: input, shape index: {}]   ;;  %s2638_s5 = inlined_call_operand.vmem [shape: f32[1,32], index: 5, kind: input, shape index: {}]   ;;  %s2639_s6 = inlined_call_operand.vmem [shape: f32[32,64], index: 6, kind: input, shape index: {}]   ;;  %s2640_s7 = inlined_call_operand.vmem [shape: f32[1,64], index: 7, kind: input, shape index: {}]   ;;  %s2641_s8 = inlined_call_operand.vmem [shape: f32[64,32], index: 8, kind: input, shape index: {}]   ;;  %s2642_s9 = inlined_call_operand.vmem [shape: f32[1,32], index: 9, kind: input, shape index: {}]   ;;  %s2643_s10 = inlined_call_operand.vmem [shape: f32[1,32], index: 10, kind: input, shape index: {}]   ;;  %s2644_s11 = inlined_call_operand.vmem [shape: f32[1,32], index: 11, kind: input, shape index: {}]   ;;  %s2645_s12 = inlined_call_operand.hbm [shape: f32[2,8,32], index: 12, kind: output, shape index: {}]  }
   0x1   :  { %19 = vsyncpa [#allocation3 + $0x1], 0 }
   0x2   :  { %20 = vsyncpa [#allocation4], 0 }
   0x3   :  { %22 = vsyncpa [#allocation4 + $0x1], 0  ;;  %s2285_s21 = smov 0   ;;  %s2287_s22 = smov 0  }
   0x4   :  { %s2289_s23 = smov 0   ;;  %s2291_s24 = smov 0  }
   0x5 LB: > { %2650 = sst [smem:[#allocation8_spill]] %s2198_s23  ;;  %s2306_s25 = sadd.s32 4294967295, %s2202_s24   ;;  %s2202_s24 = sphi %s2291_s24, %s2663_s24   ;;  %s2198_s23 = sphi %s2289_s23, %s2665_s23   ;;  %s2194_s22 = sphi %s2287_s22, %s2667_s22   ;;  %s2190_s21 = sphi %s2285_s21, %s2666_s21  }
   0x6   : > { %s1817_s26 = sadd.s32 4294967294, %s2202_s24   ;;  %s2310_s27 = sadd.s32 1, %s2202_s24  }
   0x7   : > { %2651 = sst [smem:[#allocation9_spill]] %s2310_s27  ;;  %s35_s28 = sadd.s32 1, %s2198_s23 }
   0x8   : > { %s32_s29 = ssub.s32 %s2202_s24, %s2310_s27  ;;  %p42_p0 = scmp.ne.s32.totalorder %s2198_s23, %s2194_s22 }
   0x9   : > { %p33_p1 = scmp.eq.s32.totalorder %s32_s29, 0  ;;  %p43_p2 = scmp.eq.s32.totalorder %s2202_s24, 0 }
   0xa   : > { %p48_p3 = scmp.ne.s32.totalorder %s2194_s22, %s2190_s21  ;;  %p49_p4 = scmp.eq.s32.totalorder %s2306_s25, 0 }
   0xb   : > { %s2322_s30 = scalar_select %p33_p1, %s2198_s23, %s35_s28  }
   0xc   : > { %p2324_p5 = por %p43_p2, %p42_p0  ;;  %p2328_p6 = por %p49_p4, %p48_p3 }
   0xd   : > { %2652 = sst [smem:[#allocation10_spill]] %s2322_s30  ;;  %p303_p7 = scmp.eq.s32.totalorder %s2306_s25, 1 }
   0xe   : > { %p309_p8 = scmp.eq.s32.totalorder %s1817_s26, 1  ;;  %p2038_p10 = scmp.lt.s32.totalorder %s2202_s24, 2 }
   0xf   : > { %p2335_p11 = por %p303_p7, %p42_p0  ;;  %s362_s17 = sand.u32 1, %s2198_s23  }
  0x10   : > { %p2339_p12 = por %p309_p8, %p48_p3  ;;  %s1821_s18 = sshll.u32 %s2202_s24, 7 }
  0x11   : > { %s2655_s15 = scalar_select %p2335_p11, 1, 0 }
  0x12   : > { %s2656_s16 = scalar_select %p2339_p12, 1, 0 }
  0x13   : > { %s1820_s19 = sshll.u32 %s362_s17, 3  ;;  %s2348_s29 = scalar_lea.hbm %s2633_s0, %s1821_s18 }
  0x14   : > { %s366_s26 = scalar_lea.vmem [#allocation2], %s1820_s19  ;;  %p2352_p13 = pnand %p2038_p10, %p2324_p5 }
  0x15   : > { %s373_s30 = sshll.u32 %s366_s26, 4  ;;  %s363_s20 = scalar_lea.sflag [#allocation3], %s362_s17  ;;  %s2356_s30 = int_to_ptr.vmem [resolvable:$true] %s373_s30 }
  0x16   : > { %s2106_s18 = scalar_lea.hbm %s2348_s29, 128  ;;  %p2108_p3 = pneg %p2352_p13 }
  0x17   : > { %p2107_p2 = scmp.ne.s32.totalorder %s2348_s29, %s2106_s18  ;;  %s2111_s28 = scalar_lea.hbm %s2633_s0, 256 }
  0x18   : > { %p2112_p5 = scmp.lt.u32.totalorder %s2348_s29, %s2633_s0  ;;  %p2113_p8 = scmp.lt.u32.totalorder %s2111_s28, %s2106_s18 }
  0x19   : > { %p2109_p4 = pnand %p2108_p3, %p2107_p2  ;;  %p2115_p9 = scmp.lt.u32.totalorder %s2106_s18, %s2348_s29 }
  0x1a   : > { %p2114_p10 = por %p2113_p8, %p2112_p5 }
  0x1b   : > { %p2110_p7 = pneg %p2109_p4 }
  0x1c   : > { %p2116_p0 = por %p2115_p9, %p2114_p10 }
  0x1e   : > { %p2117_p1 = pnand %p2116_p0, %p2110_p7 }
  0x20   : > { %2120 = shalt.err (!%p2117_p1)
}
  0x21   : > { %s2121_s17 = scalar_lea.vmem %s2356_s30, 128  ;;  %s2204_s13 = smov [#allocation2]  }
  0x22   : > { %p2122_p2 = scmp.ne.s32.totalorder %s2356_s30, %s2121_s17  ;;  %s2126_s19 = sshll.u32 %s2204_s13, 4  ;;  %s2127_s19 = int_to_ptr.vmem [resolvable:$false] %s2126_s19 }
  0x23   : > { %s2128_s23 = scalar_lea.vmem %s2127_s19, 256  ;;  %p2129_p11 = scmp.lt.s32.totalorder %s2356_s30, %s2127_s19 }
  0x24   : > { %p2124_p4 = pnand %p2122_p2, %p2108_p3  ;;  %p2130_p5 = scmp.lt.s32.totalorder %s2128_s23, %s2121_s17 }
  0x26   : > { %p2125_p12 = pneg %p2124_p4  ;;  %p2131_p8 = por %p2130_p5, %p2129_p11 }
  0x28   : > { %p2132_p9 = pnand %p2131_p8, %p2125_p12 }
  0x2a   : > { %2135 = shalt.err (!%p2132_p9)
}
  0x2b   : > { %2033 = dma.hbm_to_vmem [thread:$0]  (!%p2352_p13), %s2348_s29, 128, %s2356_s30, %s363_s20  }
  0x2c   : > { %p2658_p0 = scmp.lt.s32.totalorder %s2202_s24, 3  ;;  %p2659_p1 = scmp.ge.s32.totalorder %s2202_s24, 1 }
  0x2e   : > { %p379_p3 = pnand %p2659_p1, %p2658_p0 }
  0x2f   : > { %s2390_s18 = sand.u32 (!%p379_p3), 1, %s2194_s22  }
  0x30   : > { %382 = sbr.rel (%p379_p3) target bundleno = 3186 (0xc72), region = 68  ;;  %s1823_s28 = sshll.u32 (!%p379_p3), %s2390_s18, 3 }
  0x31   : > { %s385_s26 = scalar_lea.sflag (!%p379_p3), [#allocation3], %s2390_s18  ;;  %s388_s27 = scalar_lea.vmem (!%p379_p3), [#allocation2], %s1823_s28 }
  0x37   : > { %2181 = dma.done.wait (%p2328_p6), %s385_s26, 128  }
  0x38   : > { %2183 = vsyncadd (%p2328_p6), %s385_s26, 4294967168  ;;  %v2205_v0 = vmov 0.0|0.0   ;;  %vm2206_vm0 = vmmov 0   ;;  %v2207_v1 = vmov 0.0   ;;  %v430_v2 = vld [vmem:[%s2634_s1] sm:$0xff]  ;;  %v431_v3 = vld [vmem:[%s2634_s1 + $0x8] sm:$0xff] }
  0x39   : > { %2002 = vmatprep.subr.bf16.mxu0 %v2205_v0  ;;  %1909 = vmatprep.mubr.msk.f32.mxu0 %vm2206_vm0, %v2207_v1  ;;  %v432_v4 = vld [vmem:[%s2634_s1 + $0x10] sm:$0xff]  ;;  %v2003_v5 = vpack.c.bf16 %v431_v3, %v430_v2  ;;  %v433_v6 = vld [vmem:[%s2634_s1 + $0x18] sm:$0xff]  ;;  %v2419_v8 = vld [vmem:[%s388_s27] sm:$0xff]  ;;  %vm434_vm1 = vcmask 261120   ;;  %s2208_s26 = smov 120   ;;  %s2209_s30 = smov 96  }
  0x3a   : > { %1917 = vmatprep.subr.mxu1 %v2207_v1  ;;  %1919 = vmatprep.mubr.msk.f32.mxu1 %vm2206_vm0, %v2207_v1  ;;  %v2006_v7 = vpack.c.bf16 %v433_v6, %v432_v4  ;;  %s2210_s27 = smov 88   ;;  %vm511_vm2 = vcmask 64512   ;;  %s2211_s29 = smov 56   ;;  %v1832_v32 = vld [vmem:[%s2635_s2 + $0x8] sm:$0xff]  ;;  %v674_v41 = vld [vmem:[%s2635_s2] sm:$0xff]  ;;  %v1838_v6 = vld [vmem:[%s2635_s2 + $0x10] sm:$0xff] }
  0x3b   : > { %2004 = vmatpush3.bf16.msra.mxu0 %v2003_v5  ;;  %s2212_s20 = smov 64   ;;  %s2213_s14 = smov 80   ;;  %vm1620_vm3 = vcmask 523264  }
  0x3c   : > { %2005 = vmatprep.subr.bf16.mxu0 %v2205_v0  ;;  %s2214_s17 = smov 112   ;;  %s1855_s13 = sshll.u32 %s2306_s25, 7 }
  0x3d   : > { %s428_s19 = scalar_lea.vmem [#allocation5], %s1823_s28  ;;  %p2660_p11 = scmp.ne.s32.totalorder %s2655_s15, 0 }
  0x3e   : > { %s1747_s23 = sshll.u32 %s428_s19, 4  ;;  %s2219_s25 = smov [#allocation5]   ;;  %s2590_s23 = int_to_ptr.vmem [resolvable:$true] %s1747_s23 }
  0x3f   : > { %2007 = vmatpush3.bf16.msra.mxu0 %v2006_v7  ;;  %s2140_s28 = sshll.u32 %s2219_s25, 4  ;;  %s2141_s28 = int_to_ptr.vmem [resolvable:$false] %s2140_s28 }
  0x40   : > { %1912 = vmatprep.subr.mxu0 %v2207_v1  ;;  %p2143_p7 = scmp.lt.s32.totalorder %s2590_s23, %s2141_s28 }
  0x42   : > { %1910 = vmatmul.mubr.msk.f32.vlgmr.msra.gmra.mrb[0].mxu0 %vm434_vm1, %v2419_v8 }
  0x43   : > { %1914 = vmatprep.mubr.msk.f32.mxu0 %vm2206_vm0, %v2207_v1 }
 0x115   : > { %v2426_v9 = vpop.f32.mrb[0].mxu0 }
 0x116   : > { %675 = vrot.lane.b32.xlu1 %v2426_v9, %s2208_s26  ;;  %509 = vrot.lane.b32.xlu0 %v2426_v9, %s2209_s30  ;;  %v1911_v10 = vpop.f32.mrb[1].mxu0  ;;  %s2215_s30 = smov 72  }
 0x11a   : > { %677 = vrot.lane.b32.xlu0 %v2426_v9, %s2210_s27  ;;  %s2216_s27 = smov 104  }
 0x188   : > { %v510_v11 = vpop.permute.xlu0 %509  ;;  %v676_v13 = vpop.permute.xlu1 %675 }
 0x189   : > { %1913 = vmatpush3.xpose.msk.msra.mxu0 %vm511_vm2, %v510_v11 }
 0x18a   : > { %1922 = vmatprep.subr.mxu0 %v2207_v1 }
 0x18c   : > { %1915 = vmatmul.mubr.msk.f32.vlgmr.msra.gmra.mrb[2].mxu0 %vm511_vm2, %v2426_v9  ;;  %v678_v12 = vpop.permute.xlu0 %677 }
 0x18d   : > { %1923 = vmatpush3.xpose.msk.msra.mxu0 %vm511_vm2, %v678_v12  ;;  %1924 = vmatprep.mubr.msk.f32.mxu0 %vm2206_vm0, %v2207_v1 }
 0x18e   : > { %1932 = vmatprep.subr.mxu0 %v2207_v1 }
 0x190   : > { %1925 = vmatmul.mubr.msk.f32.vlgmr.msra.gmra.mrb[4].mxu0 %vm511_vm2, %v676_v13 }
 0x191   : > { %1934 = vmatprep.mubr.msk.f32.mxu0 %vm2206_vm0, %v2207_v1  ;;  %1933 = vmatpush3.msra.mxu0 %v1832_v32  ;;  %v1522_v32 = vld [vmem:[%s2639_s6 + $0x10] sm:$0xff] }
 0x192   : > { %1942 = vmatprep.subr.mxu0 %v2207_v1 }
 0x25f   : > { %v582_v14 = vpop.f32.mrb[2].mxu0 }
 0x260   : > { %v586_v15 = vmul.f32 0.35355338, %v582_v14  ;;  %v1916_v16 = vpop.f32.mrb[3].mxu0 }
 0x262   : > { %v587_v17 = vsel %vm511_vm2, %v586_v15, -inf }
 0x263   : > { %588 = vmax.xlane.f32.xlu1 %v587_v17  ;;  %v749_v18 = vpop.f32.mrb[4].mxu0 }
 0x264   : > { %v753_v19 = vmul.f32 0.35355338, %v749_v18  ;;  %v1926_v20 = vpop.f32.mrb[5].mxu0 }
 0x266   : > { %v754_v21 = vsel %vm511_vm2, %v753_v19, -inf }
 0x267   : > { %755 = vmax.xlane.f32.xlu0 %v754_v21  ;;  %v1843_v21 = vld [vmem:[%s2635_s2 + $0x18] sm:$0xff] }
 0x2f0   : > { %v589_v22 = vpop.xlane.xlu1 %588 }
 0x2f1   : > { %v590_v23 = vsub.f32 %v586_v15, %v589_v22 }
 0x2f3   : > { %v591_v24 = vmul.f32 1.442695, %v590_v23 }
 0x2f4   : > { %v756_v25 = vpop.xlane.xlu0 %755 }
 0x2f5   : > { %2086 = vpow2.f32 %v591_v24  ;;  %v757_v26 = vsub.f32 %v753_v19, %v756_v25 }
 0x2f7   : > { %v758_v27 = vmul.f32 1.442695, %v757_v26 }
 0x2f9   : > { %2088 = vpow2.f32 %v758_v27 }
 0x2ff   : > { %v2087_v28 = vpop.eup %2086 }
 0x300   : > { %v593_v29 = vsel %vm511_vm2, %v2087_v28, 0.0 }
 0x301   : > { %594 = vadd.xlane.f32.xlu0 %v593_v29  ;;  %v1520_v29 = vld [vmem:[%s2639_s6] sm:$0xff] }
 0x303   : > { %v2089_v30 = vpop.eup %2088 }
 0x304   : > { %v760_v31 = vsel %vm511_vm2, %v2089_v30, 0.0 }
 0x305   : > { %761 = vadd.xlane.f32.xlu1 %v760_v31 }
 0x316   : > { %765 = vrot.lane.b32.xlu1 %v2426_v9, %s2211_s29  ;;  %s2217_s29 = smov 48  }
 0x317   : > { %598 = vrot.lane.b32.xlu0 %v2426_v9, %s2212_s20  ;;  %s2136_s20 = scalar_lea.vmem %s2590_s23, 128 }
 0x318   : > { %p2137_p6 = scmp.ne.s32.totalorder %s2590_s23, %s2136_s20 }
 0x31a   : > { %991 = vrot.lane.b32.xlu1 %v2426_v9, %s2213_s14  ;;  %p2138_p12 = pnand %p2137_p6, %p2660_p11  ;;  %s2142_s14 = scalar_lea.vmem %s2141_s28, 256 }
 0x31b   : > { %989 = vrot.lane.b32.xlu0 %v2426_v9, %s2214_s17  ;;  %s2218_s17 = smov 40   ;;  %p2144_p10 = scmp.lt.s32.totalorder %s2142_s14, %s2136_s20 }
 0x31c   : > { %p2139_p13 = pneg %p2138_p12 }
 0x31d   : > { %p2145_p2 = por %p2144_p10, %p2143_p7 }
 0x31f   : > { %p2146_p4 = pnand %p2145_p2, %p2139_p13 }
 0x38e   : > { %v595_v33 = vpop.xlane.xlu0 %594 }
 0x38f   : > { %2090 = vrcp.f32 %v595_v33 }
 0x392   : > { %v762_v34 = vpop.xlane.xlu1 %761  ;;  %v599_v35 = vpop.permute.xlu0 %598 }
 0x393   : > { %2092 = vrcp.f32 %v762_v34  ;;  %1918 = vmatpush3.msra.mxu1 %v599_v35  ;;  %v1605_v34 = vld [vmem:[%s2641_s8] sm:$0xff]  ;;  %v1606_v35 = vld [vmem:[%s2641_s8 + $0x8] sm:$0xff] }
 0x394   : > { %1927 = vmatprep.subr.mxu1 %v2207_v1 }
 0x396   : > { %v766_v38 = vpop.permute.xlu1 %765  ;;  %v990_v47 = vpop.permute.xlu0 %989 }
 0x399   : > { %v2091_v36 = vpop.eup %2090 }
 0x39a   : > { %v597_v37 = vmul.f32 %v2091_v36, %v2087_v28  ;;  %v992_v45 = vpop.permute.xlu1 %991  ;;  %v1607_v36 = vld [vmem:[%s2641_s8 + $0x10] sm:$0xff] }
 0x39c   : > { %1920 = vmatmul.mubr.msk.f32.vlgmr.msra.gmra.mrb[0].mxu1 %vm511_vm2, %v597_v37  ;;  %v2015_v37 = vpack.c.bf16 %v1606_v35, %v1605_v34 }
 0x39d   : > { %v2093_v39 = vpop.eup %2092  ;;  %1928 = vmatpush3.msra.mxu1 %v766_v38  ;;  %1929 = vmatprep.mubr.msk.f32.mxu1 %vm2206_vm0, %v2207_v1  ;;  %v1608_v38 = vld [vmem:[%s2641_s8 + $0x18] sm:$0xff] }
 0x39e   : > { %v764_v40 = vmul.f32 %v2093_v39, %v2089_v30  ;;  %1937 = vmatprep.subr.mxu1 %v2207_v1  ;;  %v1521_v30 = vld [vmem:[%s2639_s6 + $0x8] sm:$0xff]  ;;  %v2018_v39 = vpack.c.bf16 %v1608_v38, %v1607_v36 }
 0x39f   : > { %v2009_v31 = vpack.c.bf16 %v1521_v30, %v1520_v29 }
 0x3a0   : > { %1930 = vmatmul.mubr.msk.f32.vlgmr.msra.gmra.mrb[2].mxu1 %vm511_vm2, %v764_v40  ;;  %v1609_v40 = vld [vmem:[%s2641_s8 + $0x20] sm:$0xff] }
 0x3a1   : > { %1939 = vmatprep.mubr.msk.f32.mxu1 %vm2206_vm0, %v2207_v1  ;;  %1938 = vmatpush3.msra.mxu1 %v674_v41  ;;  %v1610_v41 = vld [vmem:[%s2641_s8 + $0x28] sm:$0xff] }
 0x3a2   : > { %1947 = vmatprep.subr.mxu1 %v2207_v1 }
 0x46f   : > { %v670_v42 = vpop.f32.mrb[0].mxu1 }
 0x470   : > { %v1921_v43 = vpop.f32.mrb[1].mxu1  ;;  %1940 = vmatmul.mubr.msk.f32.vlgmr.msra.gmra.mrb[4].mxu1 %vm511_vm2, %v670_v42  ;;  %v2021_v42 = vpack.c.bf16 %v1610_v41, %v1609_v40 }
 0x471   : > { %1949 = vmatprep.mubr.msk.f32.mxu1 %vm2206_vm0, %v2207_v1 }
 0x473   : > { %v837_v44 = vpop.f32.mrb[2].mxu1 }
 0x474   : > { %v1931_v46 = vpop.f32.mrb[3].mxu1  ;;  %1935 = vmatmul.mubr.msk.f32.vlgmr.msra.gmra.mrb[6].mxu0 %vm511_vm2, %v837_v44  ;;  %v1845_v44 = vld [vmem:[%s2636_s3] ss:$0 sm:$0xff] }
 0x475   : > { %1943 = vmatpush3.xpose.msk.msra.mxu0 %vm511_vm2, %v992_v45  ;;  %1944 = vmatprep.mubr.msk.f32.mxu0 %vm2206_vm0, %v2207_v1 }
 0x476   : > { %1952 = vmatprep.subr.mxu0 %v2207_v1 }
 0x478   : > { %1945 = vmatmul.mubr.msk.f32.vlgmr.msra.gmra.mrb[8].mxu0 %vm511_vm2, %v990_v47 }
 0x479   : > { %1954 = vmatprep.mubr.msk.f32.mxu0 %vm2206_vm0, %v2207_v1  ;;  %1953 = vmatpush3.msra.mxu0 %v1838_v6 }
 0x47a   : > { %1962 = vmatprep.subr.mxu0 %v2207_v1 }
 0x543   : > { %v985_v48 = vpop.f32.mrb[4].mxu1 }
 0x544   : > { %v1941_v49 = vpop.f32.mrb[5].mxu1 }
 0x547   : > { %v912_v50 = vpop.f32.mrb[6].mxu0 }
 0x548   : > { %v2477_v51 = vadd.f32 %v985_v48, %v912_v50  ;;  %v1936_v52 = vpop.f32.mrb[7].mxu0 }
 0x54b   : > { %v1063_v53 = vpop.f32.mrb[8].mxu0 }
 0x54c   : > { %v1067_v54 = vmul.f32 0.35355338, %v1063_v53  ;;  %v1946_v55 = vpop.f32.mrb[9].mxu0 }
 0x54e   : > { %v1068_v56 = vsel %vm511_vm2, %v1067_v54, -inf }
 0x54f   : > { %1069 = vmax.xlane.f32.xlu1 %v1068_v56 }
 0x560   : > { %1233 = vrot.lane.b32.xlu1 %v2426_v9, %s2215_s30 }
 0x564   : > { %1231 = vrot.lane.b32.xlu1 %v2426_v9, %s2216_s27  ;;  %s2588_s27 = scalar_lea.hbm %s2645_s12, %s1855_s13 }
 0x5dc   : > { %v1070_v57 = vpop.xlane.xlu1 %1069 }
 0x5dd   : > { %v1071_v58 = vsub.f32 %v1067_v54, %v1070_v57 }
 0x5df   : > { %v1072_v59 = vmul.f32 1.442695, %v1071_v58 }
 0x5e0   : > { %v1234_v3 = vpop.permute.xlu1 %1233 }
 0x5e1   : > { %2094 = vpow2.f32 %v1072_v59 }
 0x5e4   : > { %v1232_v5 = vpop.permute.xlu1 %1231 }
 0x5eb   : > { %v2095_v60 = vpop.eup %2094 }
 0x5ec   : > { %v1074_v61 = vsel %vm511_vm2, %v2095_v60, 0.0 }
 0x5ed   : > { %1075 = vadd.xlane.f32.xlu0 %v1074_v61 }
 0x603   : > { %1079 = vrot.lane.b32.xlu0 %v2426_v9, %s2217_s29  ;;  %s1734_s29 = scalar_lea.sflag [#allocation4], %s2390_s18 }
 0x67a   : > { %v1076_v62 = vpop.xlane.xlu0 %1075 }
 0x67b   : > { %2096 = vrcp.f32 %v1076_v62 }
 0x67e   : > { %v1080_v63 = vpop.permute.xlu0 %1079 }
 0x67f   : > { %1948 = vmatpush3.msra.mxu1 %v1080_v63 }
 0x680   : > { %1957 = vmatprep.subr.mxu1 %v2207_v1 }
 0x685   : > { %v2097_v2 = vpop.eup %2096 }
 0x686   : > { %v1078_v4 = vmul.f32 %v2097_v2, %v2095_v60 }
 0x688   : > { %1950 = vmatmul.mubr.msk.f32.vlgmr.msra.gmra.mrb[6].mxu1 %vm511_vm2, %v1078_v4 }
 0x689   : > { %1958 = vmatpush3.xpose.msk.msra.mxu1 %vm511_vm2, %v1234_v3  ;;  %1959 = vmatprep.mubr.msk.f32.mxu1 %vm2206_vm0, %v2207_v1 }
 0x68a   : > { %1967 = vmatprep.subr.mxu1 %v2207_v1 }
 0x68c   : > { %1960 = vmatmul.mubr.msk.f32.vlgmr.msra.gmra.mrb[8].mxu1 %vm511_vm2, %v1232_v5  ;;  %v1846_v5 = vld [vmem:[%s2637_s4] ss:$0 sm:$0xff] }
 0x68d   : > { %1969 = vmatprep.mubr.msk.f32.mxu1 %vm2206_vm0, %v2207_v1  ;;  %1968 = vmatpush3.msra.mxu1 %v1843_v21 }
 0x68e   : > { %2014 = vmatprep.subr.bf16.mxu1 %v2205_v0 }
 0x75b   : > { %v1151_v7 = vpop.f32.mrb[6].mxu1 }
 0x75c   : > { %v1951_v10 = vpop.f32.mrb[7].mxu1  ;;  %1955 = vmatmul.mubr.msk.f32.vlgmr.msra.gmra.mrb[10].mxu0 %vm511_vm2, %v1151_v7  ;;  %v1847_v7 = vld [vmem:[%s2638_s5] ss:$0 sm:$0xff] }
 0x75d   : > { %1964 = vmatprep.mubr.msk.f32.mxu0 %vm2206_vm0, %v2207_v1 }
 0x75f   : > { %v1305_v11 = vpop.f32.mrb[8].mxu1 }
 0x760   : > { %v1309_v12 = vmul.f32 0.35355338, %v1305_v11  ;;  %v1961_v13 = vpop.f32.mrb[9].mxu1 }
 0x761   : > { %v1612_v13 = vld [vmem:[%s2641_s8 + $0x38] sm:$0xff] }
 0x762   : > { %v1310_v14 = vsel %vm511_vm2, %v1309_v12, -inf }
 0x763   : > { %1311 = vmax.xlane.f32.xlu0 %v1310_v14 }
 0x779   : > { %1321 = vrot.lane.b32.xlu0 %v2426_v9, %s2218_s17 }
 0x7f0   : > { %v1312_v15 = vpop.xlane.xlu0 %1311 }
 0x7f1   : > { %v1313_v16 = vsub.f32 %v1309_v12, %v1312_v15  ;;  %v1611_v12 = vld [vmem:[%s2641_s8 + $0x30] sm:$0xff]  ;;  %v1848_v15 = vld [vmem:[%s2640_s7] ss:$0 sm:$0xff] }
 0x7f2   : > { %v2024_v14 = vpack.c.bf16 %v1612_v13, %v1611_v12 }
 0x7f3   : > { %v1314_v17 = vmul.f32 1.442695, %v1313_v16 }
 0x7f4   : > { %v1322_v18 = vpop.permute.xlu0 %1321 }
 0x7f5   : > { %2098 = vpow2.f32 %v1314_v17  ;;  %1963 = vmatpush3.msra.mxu0 %v1322_v18 }
 0x7f6   : > { %2008 = vmatprep.subr.bf16.mxu0 %v2205_v0 }
 0x7ff   : > { %v2099_v19 = vpop.eup %2098 }
 0x800   : > { %v1316_v20 = vsel %vm511_vm2, %v2099_v19, 0.0 }
 0x801   : > { %1317 = vadd.xlane.f32.xlu1 %v1316_v20  ;;  %v1850_v20 = vld [vmem:[%s2642_s9] ss:$0 sm:$0xff] }
 0x82f   : > { %v1226_v9 = vpop.f32.mrb[10].mxu0 }
 0x830   : > { %v1230_v22 = vadd.f32 %v1226_v9, %v2477_v51  ;;  %v1956_v23 = vpop.f32.mrb[11].mxu0 }
 0x88e   : > { %v1318_v24 = vpop.xlane.xlu1 %1317 }
 0x88f   : > { %2100 = vrcp.f32 %v1318_v24 }
 0x899   : > { %v2101_v25 = vpop.eup %2100 }
 0x89a   : > { %v1320_v26 = vmul.f32 %v2101_v25, %v2099_v19 }
 0x89c   : > { %1965 = vmatmul.mubr.msk.f32.vlgmr.msra.gmra.mrb[12].mxu0 %vm511_vm2, %v1320_v26 }
 0x89d   : > { %1980 = vmatprep.mubr.msk.f32.mxu0 %vm2206_vm0, %v2207_v1  ;;  %2010 = vmatpush3.bf16.msra.mxu0 %v2009_v31 }
 0x89e   : > { %2011 = vmatprep.subr.bf16.mxu0 %v2205_v0 }
 0x96f   : > { %v1393_v27 = vpop.f32.mrb[12].mxu0 }
 0x970   : > { %v1966_v28 = vpop.f32.mrb[13].mxu0  ;;  %1970 = vmatmul.mubr.msk.f32.vlgmr.msra.gmra.mrb[10].mxu1 %vm511_vm2, %v1393_v27 }
 0x971   : > { %1999 = vmatprep.mubr.msk.f32.mxu1 %vm2206_vm0, %v2207_v1  ;;  %v1523_v1 = vld [vmem:[%s2639_s6 + $0x18] sm:$0xff]  ;;  %2016 = vmatpush3.bf16.msra.mxu1 %v2015_v37 }
 0x972   : > { %v2012_v33 = vpack.c.bf16 %v1523_v1, %v1522_v32  ;;  %2017 = vmatprep.subr.bf16.mxu1 %v2205_v0 }
 0x974   : > { %2013 = vmatpush3.bf16.msra.mxu0 %v2012_v33 }
 0x975   : > { %2019 = vmatpush3.bf16.msra.mxu1 %v2018_v39 }
 0x976   : > { %2020 = vmatprep.subr.bf16.mxu1 %v2205_v0 }
 0x979   : > { %2022 = vmatpush3.bf16.msra.mxu1 %v2021_v42 }
 0x97a   : > { %2023 = vmatprep.subr.bf16.mxu1 %v2205_v0 }
 0x97d   : > { %2025 = vmatpush3.bf16.msra.mxu1 %v2024_v14 }
 0xa43   : > { %v1468_v43 = vpop.f32.mrb[10].mxu1 }
 0xa44   : > { %v1472_v45 = vadd.f32 %v1468_v43, %v1230_v22  ;;  %v1971_v46 = vpop.f32.mrb[11].mxu1  ;;  %v1852_v43 = vld [vmem:[%s2643_s10] ss:$0 sm:$0xff] }
 0xa46   : > { %v1480_v47 = vadd.f32 %v1845_v44, %v1472_v45  ;;  %v1853_v45 = vld [vmem:[%s2644_s11] ss:$0 sm:$0xff] }
 0xa48   : > { %v1481_v48 = vadd.f32 %v1480_v47, %v2419_v8 }
 0xa4a   : > { %v1484_v49 = vsel %vm434_vm1, %v1481_v48, 0.0 }
 0xa4b   : > { %v1485_v50 = vrot.slane %v1484_v49, 4 }
 0xa4d   : > { %v1486_v51 = vadd.f32 %v1485_v50, %v1484_v49 }
 0xa4f   : > { %v1487_v52 = vrot.slane %v1486_v51, 2 }
 0xa51   : > { %v1488_v53 = vadd.f32 %v1487_v52, %v1486_v51 }
 0xa53   : > { %v1489_v54 = vrot.slane %v1488_v53, 1 }
 0xa55   : > { %v1490_v55 = vadd.f32 %v1489_v54, %v1488_v53 }
 0xa57   : > { %v1492_v56 = vmul.f32 0.125, %v1490_v55 }
 0xa59   : > { %v1493_v0 = vsub.f32 %v1481_v48, %v1492_v56 }
 0xa5b   : > { %v1494_v57 = vmul.f32 %v1493_v0, %v1493_v0 }
 0xa5d   : > { %v1495_v58 = vsel %vm434_vm1, %v1494_v57, 0.0 }
 0xa5e   : > { %v1496_v59 = vrot.slane %v1495_v58, 4 }
 0xa60   : > { %v1497_v60 = vadd.f32 %v1496_v59, %v1495_v58 }
 0xa62   : > { %v1498_v61 = vrot.slane %v1497_v60, 2 }
 0xa64   : > { %v1499_v62 = vadd.f32 %v1498_v61, %v1497_v60 }
 0xa66   : > { %v1500_v63 = vrot.slane %v1499_v62, 1 }
 0xa68   : > { %v1501_v2 = vadd.f32 %v1500_v63, %v1499_v62 }
 0xa6a   : > { %v1502_v8 = vmul.f32 0.125, %v1501_v2 }
 0xa6c   : > { %v1503_v3 = vadd.f32 1e-05, %v1502_v8 }
 0xa6e   : > { %2102 = vrsqrt.f32 %v1503_v3 }
 0xa78   : > { %v2103_v4 = vpop.eup %2102 }
 0xa79   : > { %v1505_v6 = vmul.f32 %v2103_v4, %v1493_v0 }
 0xa7b   : > { %v1512_v10 = vmul.f32 %v1846_v5, %v1505_v6 }
 0xa7d   : > { %v1519_v11 = vadd.f32 %v1847_v7, %v1512_v10 }
 0xa7f   : > { %1981 = vmatmul.mubr.msk.f32.vlgmr.msra.gmra.mrb[14].mxu0 %vm434_vm1, %v1519_v11 }
 0xb52   : > { %v1600_v16 = vpop.f32.mrb[14].mxu0 }
 0xb53   : > { %v1601_v17 = vadd.f32 %v1848_v15, %v1600_v16  ;;  %v1982_v18 = vpop.f32.mrb[15].mxu0 }
 0xb55   : > { %v1604_v19 = vmax.f32 %v1601_v17, 0.0 }
 0xb57   : > { %2000 = vmatmul.mubr.msk.f32.vlgmr.msra.gmra.mrb[12].mxu1 %vm1620_vm3, %v1604_v19 }
 0xc2a   : > { %v1690_v21 = vpop.f32.mrb[12].mxu1 }
 0xc2b   : > { %v1691_v9 = vadd.f32 %v1850_v20, %v1690_v21  ;;  %v2001_v22 = vpop.f32.mrb[13].mxu1 }
 0xc2d   : > { %v1694_v23 = vadd.f32 %v1691_v9, %v1519_v11 }
 0xc2f   : > { %v1697_v24 = vsel %vm434_vm1, %v1694_v23, 0.0 }
 0xc30   : > { %v1698_v25 = vrot.slane %v1697_v24, 4 }
 0xc32   : > { %v1699_v26 = vadd.f32 %v1698_v25, %v1697_v24 }
 0xc34   : > { %v1700_v27 = vrot.slane %v1699_v26, 2 }
 0xc36   : > { %v1701_v28 = vadd.f32 %v1700_v27, %v1699_v26 }
 0xc38   : > { %v1702_v29 = vrot.slane %v1701_v28, 1 }
 0xc3a   : > { %v1703_v30 = vadd.f32 %v1702_v29, %v1701_v28 }
 0xc3c   : > { %v1704_v31 = vmul.f32 0.125, %v1703_v30 }
 0xc3e   : > { %v1705_v32 = vsub.f32 %v1694_v23, %v1704_v31 }
 0xc40   : > { %v1706_v1 = vmul.f32 %v1705_v32, %v1705_v32 }
 0xc42   : > { %v1707_v33 = vsel %vm434_vm1, %v1706_v1, 0.0 }
 0xc43   : > { %v1708_v34 = vrot.slane %v1707_v33, 4 }
 0xc45   : > { %v1709_v35 = vadd.f32 %v1708_v34, %v1707_v33 }
 0xc47   : > { %v1710_v36 = vrot.slane %v1709_v35, 2 }
 0xc49   : > { %v1711_v37 = vadd.f32 %v1710_v36, %v1709_v35 }
 0xc4b   : > { %v1712_v38 = vrot.slane %v1711_v37, 1 }
 0xc4d   : > { %v1713_v39 = vadd.f32 %v1712_v38, %v1711_v37 }
 0xc4f   : > { %v1714_v40 = vmul.f32 0.125, %v1713_v39 }
 0xc51   : > { %v1715_v41 = vadd.f32 1e-05, %v1714_v40 }
 0xc53   : > { %2104 = vrsqrt.f32 %v1715_v41 }
 0xc5d   : > { %v2105_v42 = vpop.eup %2104 }
 0xc5e   : > { %v1717_v44 = vmul.f32 %v2105_v42, %v1705_v32 }
 0xc60   : > { %v1724_v46 = vmul.f32 %v1852_v43, %v1717_v44 }
 0xc62   : > { %v1731_v47 = vadd.f32 %v1853_v45, %v1724_v46 }
 0xc64   : > { %1732 = vst.msk [vmem:[%s428_s19] sm:$0xff] %vm434_vm1, %v1731_v47 }
 0xc65   : > { %2149 = shalt.err (!%p2146_p4)
}
 0xc66   : > { %s2150_s18 = scalar_lea.hbm %s2588_s27, 128  ;;  %s2154_s19 = scalar_lea.hbm %s2645_s12, 256 }
 0xc67   : > { %p2151_p5 = scmp.ne.s32.totalorder %s2588_s27, %s2150_s18  ;;  %p2155_p0 = scmp.lt.u32.totalorder %s2588_s27, %s2645_s12 }
 0xc68   : > { %p2156_p1 = scmp.lt.u32.totalorder %s2154_s19, %s2150_s18  ;;  %p2158_p6 = scmp.lt.u32.totalorder %s2150_s18, %s2588_s27 }
 0xc69   : > { %p2152_p8 = pnand %p2151_p5, %p2660_p11 }
 0xc6a   : > { %p2157_p3 = por %p2156_p1, %p2155_p0 }
 0xc6b   : > { %p2153_p9 = pneg %p2152_p8 }
 0xc6c   : > { %p2159_p12 = por %p2158_p6, %p2157_p3 }
 0xc6e   : > { %p2160_p13 = pnand %p2159_p12, %p2153_p9 }
 0xc70   : > { %2163 = shalt.err (!%p2160_p13)
}
 0xc71   : > { %2028 = dma.vmem_to_hbm [thread:$0]  (%p2660_p11), %s2590_s23, 128, %s2588_s27, %s1734_s29  }
 0xc72 PF: > { %s1759_s20 = sand.u32 1, %s2190_s21   ;;  %p2661_p7 = scmp.ne.s32.totalorder %s2656_s16, 0 }
 0xc73   : > { %p2662_p10 = scmp.ge.s32.totalorder %s2202_s24, 2  ;;  %s1760_s25 = scalar_lea.sflag [#allocation4], %s1759_s20 }
 0xc75   : > { %p2035_p2 = pnand %p2662_p10, %p2661_p7 }
 0xc77   : > { %2185 = dma.done.wait (!%p2035_p2), %s1760_s25, 128  }
 0xc78   : > { %2187 = vsyncadd (!%p2035_p2), %s1760_s25, 4294967168  ;;  %s2663_s24 = sld [smem:[#allocation9_spill]]  ;;  %s2664_s28 = sld [smem:[#allocation8_spill]] }
 0xc79   : > { %s2665_s23 = sld [smem:[#allocation10_spill]]  ;;  %s2666_s21 = smov %s2194_s22 }
 0xc7e   : > { %p25_p4 = scmp.ge.s32.totalorder %s2663_s24, 4   ;;  %s2667_s22 = smov %s2664_s28 }
 0xc80   :  { %27 = sbr.rel (!%p25_p4) target bundleno = 5 (0x5), region = 116 }
 0xc87   :  { %1765 = vsyncpa [#allocation3], 1 }
 0xc88   :  { %1767 = vsyncpa [#allocation3 + $0x1], 1 }
 0xc89   :  { %1768 = vsyncpa [#allocation4], 1 }
 0xc8a   :  { %1770 = vsyncpa [#allocation4 + $0x1], 1 }

</bundles_post_ra>
